<compile_context>
chip_gen: v5e
topology: v5e:2x2
jax: 0.10.0
libtpu: 0.0.40
codegen_flags: <defaults>
</compile_context>

<pallas_src>
import jax
import jax.numpy as jnp
from jax.experimental import pallas as pl
from jax.experimental.pallas import tpu as pltpu


def _round_up(x: int, m: int) -> int:
    return (x + m - 1) // m * m


def _cdiv(a: int, b: int) -> int:
    return (a + b - 1) // b


def _choose_tb(B: int, block_b: int) -> int:
    """Balance batch tiles across the real batch (avoid ~2x Bp padding blow-up),
    16-aligned so bf16 rows stay unmasked on all generations."""
    ntiles = max(1, _cdiv(B, block_b))
    return _round_up(_cdiv(B, ntiles), 16)


def _choose_tk(Ep: int, block_k: int) -> int:
    """Largest 128-multiple divisor of Ep that is <= block_k (Ep is a 128-multiple)."""
    m = Ep // 128
    dmax = max(1, block_k // 128)
    for d in range(min(dmax, m), 0, -1):
        if m % d == 0:
            return 128 * d
    return 128


_Buffered = getattr(pl, "Buffered", None)


def _block_spec(shape, index_map, buffers=None):
    """BlockSpec with optional explicit buffer count (Buffered(1) for resident operands)."""
    if buffers is not None and _Buffered is not None:
        try:
            return pl.BlockSpec(shape, index_map, pipeline_mode=_Buffered(buffers))
        except TypeError:
            pass  # older jax without pipeline_mode: fall back to default buffering
    return pl.BlockSpec(shape, index_map)


def projection_head_kernel(x_ref, w1_ref, b1_ref, w2_ref, b2_ref, o_ref, acc_ref):
    """One (batch tile, K tile) grid step of relu(x @ W1 + b1) @ W2 + b2."""
    k = pl.program_id(1)

    @pl.when(k == 0)
    def _():
        acc_ref[...] = jnp.zeros_like(acc_ref)

    # Partial first matmul over this K slice: bf16 operands, f32 accumulation.
    x_bf16 = x_ref[...].astype(jnp.bfloat16)
    acc_ref[...] += jnp.dot(x_bf16, w1_ref[...], preferred_element_type=jnp.float32)

    @pl.when(k == pl.num_programs(1) - 1)
    def _():
        h = jnp.maximum(acc_ref[...] + b1_ref[...], 0.0)        # bias + F.relu_
        out = jnp.dot(h.astype(jnp.bfloat16), w2_ref[...],
                      preferred_element_type=jnp.float32)
        o_ref[...] = (out + b2_ref[...]).astype(o_ref.dtype)


def prepare_projection_head_params(w1, b1, w2, b2):
    """One-time pad + bf16 cast of the Linear params (hoisted out of the hot path).

    w1: [emb, emb], b1: [emb], w2: [emb, head], b2: [head]  (already [in, out]).
    Zero padding is load-bearing: padded bias/weight entries must stay zero so
    padded hidden columns contribute nothing to the output.
    """
    E = w1.shape[0]
    H = w2.shape[1]
    Ep = _round_up(E, 128)   # lane-dense; optionally round to 256 on v6e/v7x when cheap
    Hp = _round_up(H, 128)
    w1p = jnp.zeros((Ep, Ep), jnp.bfloat16).at[:E, :E].set(w1.astype(jnp.bfloat16))
    w2p = jnp.zeros((Ep, Hp), jnp.bfloat16).at[:E, :H].set(w2.astype(jnp.bfloat16))
    b1p = jnp.zeros((1, Ep), jnp.float32).at[0, :E].set(b1.astype(jnp.float32))
    b2p = jnp.zeros((1, Hp), jnp.float32).at[0, :H].set(b2.astype(jnp.float32))
    return {"w1p": w1p, "b1p": b1p, "w2p": w2p, "b2p": b2p, "emb": E, "head": H}


def projection_head(x, params, *, block_b: int = 256, block_k: int = 512,
                    out_dtype=None):
    """x: [B, emb]; params: from prepare_projection_head_params. Returns [B, head]."""
    B, E = x.shape
    assert E == params["emb"], f"emb mismatch: {E} vs {params['emb']}"
    w1p, b1p, w2p, b2p = params["w1p"], params["b1p"], params["w2p"], params["b2p"]
    Ep = w1p.shape[0]
    Hp = w2p.shape[1]
    H = params["head"]
    out_dtype = out_dtype or x.dtype

    TB = _choose_tb(B, block_b)
    Bp = _round_up(B, TB)
    TK = _choose_tk(Ep, block_k)
    nk = Ep // TK

    # x: no wrapper cast (bf16 cast happens in-kernel); pad only if shapes require it.
    need_pad = (Bp != B) or (Ep != E)
    if need_pad:
        xp = jnp.zeros((Bp, Ep), x.dtype).at[:B, :E].set(x)
    else:
        xp = x

    x_isz = jnp.dtype(xp.dtype).itemsize
    o_isz = jnp.dtype(out_dtype).itemsize

    # Explicit VMEM budget: resident weights/biases + double-buffered x/out tiles
    # + f32 accumulator + h intermediates, with headroom.  Capped at v7x's 64 MiB.
    vmem_needed = (
        2 * TB * TK * x_isz                     # x tiles (double-buffered)
        + (2 if nk > 1 else 1) * TK * Ep * 2    # W1 blocks (bf16)
        + Ep * Hp * 2 + (Ep + Hp) * 4           # resident W2 (bf16) + biases (f32)
        + 2 * TB * Hp * o_isz                   # out tiles (double-buffered)
        + TB * Ep * 4                           # f32 accumulator scratch
        + TB * Ep * (4 + 2)                     # h (f32) + bf16 copy temporaries
    )
    vmem_limit = int(min(vmem_needed * 1.25 + (4 << 20), 64 << 20))
    vmem_limit = max(vmem_limit, 16 << 20)

    flops = 2 * Bp * Ep * Ep + 2 * Bp * Ep * Hp
    bytes_accessed = (xp.size * x_isz + w1p.size * 2 + w2p.size * 2
                      + b1p.size * 4 + b2p.size * 4 + Bp * Hp * o_isz)

    in_specs = [
        pl.BlockSpec((TB, TK), lambda i, k: (i, k)),                 # x tile (pipelined)
        # W1: K-tiled (double-buffered) when nk > 1, single resident buffer otherwise.
        _block_spec((TK, Ep), lambda i, k: (k, 0),
                    buffers=1 if nk == 1 else None),
        _block_spec((1, Ep), lambda i, k: (0, 0), buffers=1),        # b1 (resident)
        _block_spec((Ep, Hp), lambda i, k: (0, 0), buffers=1),       # W2 (resident)
        _block_spec((1, Hp), lambda i, k: (0, 0), buffers=1),        # b2 (resident)
    ]

    out_padded = pl.pallas_call(
        projection_head_kernel,
        out_shape=jax.ShapeDtypeStruct((Bp, Hp), out_dtype),
        grid=(Bp // TB, nk),                                          # reduction axis last
        in_specs=in_specs,
        out_specs=pl.BlockSpec((TB, Hp), lambda i, k: (i, 0)),
        scratch_shapes=[pltpu.VMEM((TB, Ep), jnp.float32)],           # first-matmul accumulator
        compiler_params=pltpu.CompilerParams(
            dimension_semantics=("parallel", "arbitrary"),
            vmem_limit_bytes=vmem_limit),
        cost_estimate=pl.CostEstimate(
            flops=flops, transcendentals=0, bytes_accessed=bytes_accessed),
    )(xp, w1p, b1p, w2p, b2p)

    # TODO(synk): for very large head sizes also tile W2's N dim (extra "parallel"
    # grid axis) so the resident Ep x Hp block stays within the v7x VMEM budget.
    if need_pad or Hp != H:
        return out_padded[:B, :H]
    return out_padded


def reference_projection_head(x, w1, b1, w2, b2):
    h = x @ w1 + b1
    h = jnp.maximum(h, 0.0)
    return h @ w2 + b2


if __name__ == "__main__":
    # Small shapes consistent with the module: batch=8, emb_size=32, head_size=16.
    B, EMB, HEAD = 8, 32, 16
    key = jax.random.PRNGKey(0)
    kx, k1, k2, k3, k4 = jax.random.split(key, 5)

    x = jax.random.normal(kx, (B, EMB), dtype=jnp.float32)

    # Deterministic parameter init (PyTorch Linear-style uniform bounds),
    # stored already transposed to [in, out] for the kernel.
    bound1 = 1.0 / (EMB ** 0.5)
    w1 = jax.random.uniform(k1, (EMB, EMB), jnp.float32, -bound1, bound1)
    b1 = jax.random.uniform(k2, (EMB,), jnp.float32, -bound1, bound1)
    w2 = jax.random.uniform(k3, (EMB, HEAD), jnp.float32, -bound1, bound1)
    b2 = jax.random.uniform(k4, (HEAD,), jnp.float32, -bound1, bound1)

    # One-time parameter preprocessing (out of the per-call path).
    params = prepare_projection_head_params(w1, b1, w2, b2)

    out = projection_head(x, params)
    out = jax.block_until_ready(out)

    ref = reference_projection_head(x, w1, b1, w2, b2)
    assert out.shape == (B, HEAD)
    # bf16 MXU operands -> relaxed tolerance vs the f32 reference.
    assert jnp.allclose(out, ref, atol=2e-2, rtol=2e-2), (
        f"mismatch vs reference, max abs diff = {jnp.max(jnp.abs(out - ref))}")

    print("KERNEL_OK")
</pallas_src>

<mosaic_0001>
module attributes {stable_mosaic.version = 11 : i64} {
  func.func @projection_head_kernel(%arg0: i32, %arg1: i32, %arg2: memref<16x128xf32, #tpu.memory_space<vmem>>, %arg3: memref<128x128xbf16, #tpu.memory_space<vmem>>, %arg4: memref<1x128xf32, #tpu.memory_space<vmem>>, %arg5: memref<128x128xbf16, #tpu.memory_space<vmem>>, %arg6: memref<1x128xf32, #tpu.memory_space<vmem>>, %arg7: memref<16x128xf32, #tpu.memory_space<vmem>>, %arg8: memref<16x128xf32, #tpu.memory_space<vmem>>) attributes {dimension_semantics = [#tpu.dimension_semantics<parallel>, #tpu.dimension_semantics<arbitrary>], iteration_bounds = array<i64: 1, 1>, scalar_prefetch = 0 : i64, scratch_operands = 1 : i64, tpu.core_type = #tpu.core_type<tc>, window_params = [{transform_indices = @transform_0, window_bounds = array<i64: 16, 128>}, {pipeline_mode = #tpu.pipeline_mode<synchronous>, transform_indices = @transform_1, window_bounds = array<i64: 128, 128>}, {pipeline_mode = #tpu.pipeline_mode<synchronous>, transform_indices = @transform_2, window_bounds = array<i64: 1, 128>}, {pipeline_mode = #tpu.pipeline_mode<synchronous>, transform_indices = @transform_3, window_bounds = array<i64: 128, 128>}, {pipeline_mode = #tpu.pipeline_mode<synchronous>, transform_indices = @transform_4, window_bounds = array<i64: 1, 128>}, {transform_indices = @transform_5, window_bounds = array<i64: 16, 128>}]} {
    %c0_i32 = arith.constant 0 : i32
    %0 = arith.cmpi eq, %arg1, %c0_i32 : i32
    %1 = arith.extui %0 : i1 to i32
    %c0_i32_0 = arith.constant 0 : i32
    %2 = arith.cmpi ne, %1, %c0_i32_0 : i32
    scf.if %2 {
      %cst_10 = arith.constant 0.000000e+00 : f32
      %13 = vector.broadcast %cst_10 : f32 to vector<16x128xf32>
      %c0_11 = arith.constant 0 : index
      %c0_12 = arith.constant 0 : index
      %14 = vector.load %arg8[%c0_11, %c0_12] : memref<16x128xf32, #tpu.memory_space<vmem>>, vector<16x128xf32>
      tpu.vector_store %arg8[%c0_11, %c0_12], %13 {strides = array<i32>} : memref<16x128xf32, #tpu.memory_space<vmem>>, vector<16x128xf32>,
    } else {
    }
    %c0 = arith.constant 0 : index
    %c0_1 = arith.constant 0 : index
    %3 = vector.load %arg2[%c0, %c0_1] : memref<16x128xf32, #tpu.memory_space<vmem>>, vector<16x128xf32>
    %4 = arith.truncf %3 : vector<16x128xf32> to vector<16x128xbf16>
    %c0_2 = arith.constant 0 : index
    %c0_3 = arith.constant 0 : index
    %5 = vector.load %arg8[%c0_2, %c0_3] : memref<16x128xf32, #tpu.memory_space<vmem>>, vector<16x128xf32>
    %c0_4 = arith.constant 0 : index
    %c0_5 = arith.constant 0 : index
    %6 = vector.load %arg3[%c0_4, %c0_5] : memref<128x128xbf16, #tpu.memory_space<vmem>>, vector<128x128xbf16>
    %cst = arith.constant dense<0.000000e+00> : vector<16x128xf32>
    %7 = tpu.matmul %4, %6, %cst {dimension_numbers = #tpu.dot_dimension_numbers<[1], [0], [0], [1], [0, 0, 1, 1], [], []>} : vector<16x128xbf16>, vector<128x128xbf16>, vector<16x128xf32> -> vector<16x128xf32>
    %8 = arith.addf %5, %7 : vector<16x128xf32>
    %c0_6 = arith.constant 0 : index
    %c0_7 = arith.constant 0 : index
    %9 = vector.load %arg8[%c0_6, %c0_7] : memref<16x128xf32, #tpu.memory_space<vmem>>, vector<16x128xf32>
    tpu.vector_store %arg8[%c0_6, %c0_7], %8 {strides = array<i32>} : memref<16x128xf32, #tpu.memory_space<vmem>>, vector<16x128xf32>,
    %c0_i32_8 = arith.constant 0 : i32
    %10 = arith.cmpi eq, %arg1, %c0_i32_8 : i32
    %11 = arith.extui %10 : i1 to i32
    %c0_i32_9 = arith.constant 0 : i32
    %12 = arith.cmpi ne, %11, %c0_i32_9 : i32
    scf.if %12 {
      %c0_10 = arith.constant 0 : index
      %c0_11 = arith.constant 0 : index
      %13 = vector.load %arg8[%c0_10, %c0_11] : memref<16x128xf32, #tpu.memory_space<vmem>>, vector<16x128xf32>
      %c0_12 = arith.constant 0 : index
      %c0_13 = arith.constant 0 : index
      %14 = vector.load %arg4[%c0_12, %c0_13] : memref<1x128xf32, #tpu.memory_space<vmem>>, vector<1x128xf32>
      %15 = vector.broadcast %14 : vector<1x128xf32> to vector<16x128xf32>
      %16 = arith.addf %13, %15 : vector<16x128xf32>
      %cst_14 = arith.constant 0.000000e+00 : f32
      %17 = vector.broadcast %cst_14 : f32 to vector<16x128xf32>
      %18 = arith.maximumf %16, %17 : vector<16x128xf32>
      %19 = arith.truncf %18 : vector<16x128xf32> to vector<16x128xbf16>
      %c0_15 = arith.constant 0 : index
      %c0_16 = arith.constant 0 : index
      %20 = vector.load %arg5[%c0_15, %c0_16] : memref<128x128xbf16, #tpu.memory_space<vmem>>, vector<128x128xbf16>
      %cst_17 = arith.constant dense<0.000000e+00> : vector<16x128xf32>
      %21 = tpu.matmul %19, %20, %cst_17 {dimension_numbers = #tpu.dot_dimension_numbers<[1], [0], [0], [1], [0, 0, 1, 1], [], []>} : vector<16x128xbf16>, vector<128x128xbf16>, vector<16x128xf32> -> vector<16x128xf32>
      %c0_18 = arith.constant 0 : index
      %c0_19 = arith.constant 0 : index
      %22 = vector.load %arg6[%c0_18, %c0_19] : memref<1x128xf32, #tpu.memory_space<vmem>>, vector<1x128xf32>
      %23 = vector.broadcast %22 : vector<1x128xf32> to vector<16x128xf32>
      %24 = arith.addf %21, %23 : vector<16x128xf32>
      %c0_20 = arith.constant 0 : index
      %c0_21 = arith.constant 0 : index
      %25 = vector.load %arg7[%c0_20, %c0_21] : memref<16x128xf32, #tpu.memory_space<vmem>>, vector<16x128xf32>
      tpu.vector_store %arg7[%c0_20, %c0_21], %24 {strides = array<i32>} : memref<16x128xf32, #tpu.memory_space<vmem>>, vector<16x128xf32>,
    } else {
    }
    return
  }
  func.func @transform_0(%arg0: i32, %arg1: i32) -> (i32, i32) {
    %c0_i32 = arith.constant 0 : i32
    return %arg0, %arg1 : i32, i32
  }
  func.func @transform_1(%arg0: i32, %arg1: i32) -> (i32, i32) {
    %c0_i32 = arith.constant 0 : i32
    %c0_i32_0 = arith.constant 0 : i32
    return %arg1, %c0_i32 : i32, i32
  }
  func.func @transform_2(%arg0: i32, %arg1: i32) -> (i32, i32) {
    %c0_i32 = arith.constant 0 : i32
    %c0_i32_0 = arith.constant 0 : i32
    %c0_i32_1 = arith.constant 0 : i32
    return %c0_i32, %c0_i32_0 : i32, i32
  }
  func.func @transform_3(%arg0: i32, %arg1: i32) -> (i32, i32) {
    %c0_i32 = arith.constant 0 : i32
    %c0_i32_0 = arith.constant 0 : i32
    %c0_i32_1 = arith.constant 0 : i32
    return %c0_i32, %c0_i32_0 : i32, i32
  }
  func.func @transform_4(%arg0: i32, %arg1: i32) -> (i32, i32) {
    %c0_i32 = arith.constant 0 : i32
    %c0_i32_0 = arith.constant 0 : i32
    %c0_i32_1 = arith.constant 0 : i32
    return %c0_i32, %c0_i32_0 : i32, i32
  }
  func.func @transform_5(%arg0: i32, %arg1: i32) -> (i32, i32) {
    %c0_i32 = arith.constant 0 : i32
    %c0_i32_0 = arith.constant 0 : i32
    return %arg0, %c0_i32 : i32, i32
  }
}

</mosaic_0001>

<bundles_post_ra>
// kernel: tpu_custom_call.1
= control target key start
LH: loop header
LB: loop body
LE: loop exit
PB: predicated region body
PF: predicated region fallthrough
CT: control target
= control target key end

     0   :  { %10 = vsyncpa [#allocation4], 0  ;;  %s533_s0 = inlined_call_operand.hbm [shape: f32[16,128], index: 0, kind: input, shape index: {}]   ;;  %s534_s1 = inlined_call_operand.hbm [shape: bf16[128,128], index: 1, kind: input, shape index: {}]   ;;  %s535_s2 = inlined_call_operand.vmem [shape: f32[1,128], index: 2, kind: input, shape index: {}]   ;;  %s536_s3 = inlined_call_operand.hbm [shape: bf16[128,128], index: 3, kind: input, shape index: {}]   ;;  %s537_s4 = inlined_call_operand.vmem [shape: f32[1,128], index: 4, kind: input, shape index: {}]   ;;  %s538_s5 = inlined_call_operand.hbm [shape: f32[16,128], index: 5, kind: output, shape index: {}]  }
   0x1   :  { %11 = vsyncpa [#allocation7], 0  ;;  %s30_s20 = sshll.u32 %s534_s1, 4  ;;  %s31_s20 = int_to_ptr.hbm [resolvable:$true] %s30_s20 }
   0x2   :  { %12 = vsyncpa [#allocation5], 0  ;;  %s471_s21 = smov [#allocation6]   ;;  %s17_s25 = sshll.u32 %s533_s0, 4  ;;  %s18_s25 = int_to_ptr.hbm [resolvable:$true] %s17_s25 }
   0x3   :  { %s32_s22 = sshll.u32 %s471_s21, 4  ;;  %s472_s26 = smov 64   ;;  %s33_s22 = int_to_ptr.vmem [resolvable:$true] %s32_s22 }
   0x4   :  { %s473_s27 = smov 4   ;;  %s474_s28 = smov [#allocation3]  }
   0x5   :  { %38 = dma.hbm_to_vmem [thread:$0]  %s31_s20, 1024, %s33_s22, [#allocation7], %s472_s26, %s472_s26, %s473_s27  }
   0x6   :  { %s19_s29 = sshll.u32 %s474_s28, 4  ;;  %s475_s30 = smov 128   ;;  %s20_s29 = int_to_ptr.vmem [resolvable:$true] %s19_s29 }
   0x7   :  { %s476_s6 = smov 8   ;;  %s45_s8 = sshll.u32 %s536_s3, 4  ;;  %s46_s8 = int_to_ptr.hbm [resolvable:$true] %s45_s8 }
   0x8   :  { %25 = dma.hbm_to_vmem [thread:$0]  %s18_s25, 256, %s20_s29, [#allocation4], %s475_s30, %s475_s30, %s476_s6  }
   0x9   :  { %s477_s9 = smov [#allocation8]  }
   0xa   :  { %s47_s0 = sshll.u32 %s477_s9, 4  ;;  %s48_s0 = int_to_ptr.vmem [resolvable:$true] %s47_s0 }
   0xb   :  { %53 = dma.hbm_to_vmem [thread:$0]  %s46_s8, 1024, %s48_s0, [#allocation7], %s472_s26, %s472_s26, %s473_s27  }
   0xc   :  { %465 = dma.done.wait [#allocation4], 256  }
   0xd   :  { %466 = vsyncadd [#allocation4], 4294967040 }
   0xe   :  { %467 = dma.done.wait [#allocation7], 2048  }
   0xf   :  { %468 = vsyncadd [#allocation7], 4294965248  ;;  %v350_v0 = vld [vmem:[#allocation6 + $0x38] sm:$0xff]  ;;  %v349_v1 = vld [vmem:[#allocation6 + $0x30] sm:$0xff]  ;;  %s478_s13 = smov [#allocation9]  }
  0x10   :  { %143 = vmatpush.bf16.msra.mxu0 %v350_v0  ;;  %v358_v2 = vld [vmem:[#allocation8 + $0x38] sm:$0xff]  ;;  %v357_v3 = vld [vmem:[#allocation8 + $0x30] sm:$0xff]  ;;  %v348_v4 = vld [vmem:[#allocation6 + $0x28] sm:$0xff]  ;;  %s263_s14 = sshll.u32 %s478_s13, 4  ;;  %s264_s14 = int_to_ptr.vmem [resolvable:$true] %s263_s14 }
  0x11   :  { %243 = vmatpush.bf16.msra.mxu1 %v358_v2  ;;  %v356_v5 = vld [vmem:[#allocation8 + $0x28] sm:$0xff]  ;;  %v347_v6 = vld [vmem:[#allocation6 + $0x20] sm:$0xff]  ;;  %v346_v8 = vld [vmem:[#allocation6 + $0x18] sm:$0xff] }
  0x12   :  { %v355_v7 = vld [vmem:[#allocation8 + $0x20] sm:$0xff]  ;;  %v345_v9 = vld [vmem:[#allocation6 + $0x10] sm:$0xff]  ;;  %v344_v10 = vld [vmem:[#allocation6 + $0x8] sm:$0xff] }
  0x13   :  { %v343_v11 = vld [vmem:[#allocation6] sm:$0xff]  ;;  %v74_v12 = vld [vmem:[#allocation3] sm:$0xff]  ;;  %v75_v13 = vld [vmem:[#allocation3 + $0x8] sm:$0xff] }
  0x14   :  { %144 = vmatpush.bf16.msra.mxu0 %v349_v1  ;;  %v76_v14 = vpack.c.bf16 %v75_v13, %v74_v12  ;;  %v354_v15 = vld [vmem:[#allocation8 + $0x18] sm:$0xff]  ;;  %v353_v16 = vld [vmem:[#allocation8 + $0x10] sm:$0xff]  ;;  %v352_v17 = vld [vmem:[#allocation8 + $0x8] sm:$0xff] }
  0x15   :  { %244 = vmatpush.bf16.msra.mxu1 %v357_v3  ;;  %v351_v18 = vld [vmem:[#allocation8] sm:$0xff]  ;;  %v367_v20 = vld [vmem:[%s535_s2] ss:$0 sm:$0xff]  ;;  %s265_s2 = sshll.u32 %s538_s5, 4  ;;  %s266_s2 = int_to_ptr.hbm [resolvable:$true] %s265_s2 }
  0x16   :  { %v368_v27 = vld [vmem:[%s537_s4] ss:$0 sm:$0xff] }
  0x18   :  { %145 = vmatpush.bf16.msra.mxu0 %v348_v4 }
  0x19   :  { %245 = vmatpush.bf16.msra.mxu1 %v356_v5 }
  0x1c   :  { %146 = vmatpush.bf16.msra.mxu0 %v347_v6 }
  0x1d   :  { %246 = vmatpush.bf16.msra.mxu1 %v355_v7 }
  0x20   :  { %147 = vmatpush.bf16.msra.mxu0 %v346_v8 }
  0x21   :  { %247 = vmatpush.bf16.msra.mxu1 %v354_v15 }
  0x24   :  { %148 = vmatpush.bf16.msra.mxu0 %v345_v9 }
  0x25   :  { %248 = vmatpush.bf16.msra.mxu1 %v353_v16 }
  0x28   :  { %149 = vmatpush.bf16.msra.mxu0 %v344_v10 }
  0x29   :  { %249 = vmatpush.bf16.msra.mxu1 %v352_v17 }
  0x2c   :  { %150 = vmatpush.bf16.msra.mxu0 %v343_v11 }
  0x2d   :  { %250 = vmatpush.bf16.msra.mxu1 %v351_v18 }
  0x2f   :  { %151 = vmatmul.bf16.vlgmr.msra.gmra.mxu0 %v76_v14 }
  0xac   :  { %v152_v19 = vpop.f32.mrf.mxu0 }
  0xad   :  { %v170_v21 = vadd.f32 %v367_v20, %v152_v19 }
  0xaf   :  { %v172_v24 = vmax.f32 %v170_v21, 0.0 }
  0xb4   :  { %v154_v22 = vpop.f32.mrf.mxu0 }
  0xb5   :  { %v171_v23 = vadd.f32 %v367_v20, %v154_v22 }
  0xb7   :  { %v173_v25 = vmax.f32 %v171_v23, 0.0 }
  0xb9   :  { %v174_v26 = vpack.c.bf16 %v173_v25, %v172_v24 }
  0xbb   :  { %251 = vmatmul.bf16.vlgmr.msra.gmra.mxu1 %v174_v26 }
 0x138   :  { %v252_v28 = vpop.f32.mrf.mxu1 }
 0x139   :  { %v253_v29 = vadd.f32 %v368_v27, %v252_v28 }
 0x13b   :  { %257 = vst [vmem:[#allocation9] sm:$0xff] %v253_v29 }
 0x140   :  { %v254_v30 = vpop.f32.mrf.mxu1 }
 0x141   :  { %v255_v31 = vadd.f32 %v368_v27, %v254_v30 }
 0x143   :  { %258 = vst [vmem:[#allocation9 + $0x8] sm:$0xff] %v255_v31 }
 0x144   :  { %271 = dma.vmem_to_hbm [thread:$0]  %s264_s14, 256, %s266_s2, [#allocation5], %s475_s30, %s475_s30, %s476_s6  }
 0x145   :  { %469 = dma.done.wait [#allocation5], 256  }
 0x146   :  { %470 = vsyncadd [#allocation5], 4294967040 }
 0x147   :  { %276 = vsyncpa [#allocation4], 1 }
 0x148   :  { %277 = vsyncpa [#allocation7], 1 }
 0x149   :  { %278 = vsyncpa [#allocation5], 1 }

</bundles_post_ra>
